<compile_context>
chip_gen: v7x
topology: tpu7x:2x2x1
jax: 0.10.0
libtpu: 0.0.40
codegen_flags: <defaults>
</compile_context>

<pallas_src>
import jax
import jax.numpy as jnp
from jax import lax
from jax.experimental import pallas as pl
from jax.experimental.pallas import tpu as pltpu


def _round_up(x, m):
    return ((x + m - 1) // m) * m


def _num_tensorcores():
    """Best-effort TensorCore count of the default device (v7x has 2 per chip)."""
    try:
        kind = jax.devices()[0].device_kind.lower()
    except Exception:
        return 1
    return 2 if "v7" in kind else 1


def critic_kernel(x_ref, w1_ref, w2_ref, tail_ref, o_ref):
    # x_ref    : (tb, state_dim) f32  -- streamed, one row tile per grid step
    # w1_ref   : (state_dim, H)  bf16 -- VMEM-resident (block (0,0) every step)
    # w2_ref   : (H, H)          bf16 -- VMEM-resident
    # tail_ref : (4, H)          f32  -- rows: b1, b2, w3 (as a row), b3 (bcast)
    # o_ref    : (1, 1, tb)      f32  -- lane-dense output slab for this tile
    x = x_ref[...].astype(jnp.bfloat16)          # free in-kernel VPU cast
    b1 = tail_ref[0:1, :]
    b2 = tail_ref[1:2, :]
    w3_row = tail_ref[2:3, :]
    b3 = tail_ref[3:4, 0:1]

    # Layers 1 & 2: bf16 MXU matmuls with f32 accumulation; bias/tanh in f32.
    h1 = jnp.tanh(jnp.dot(x, w1_ref[...], preferred_element_type=jnp.float32) + b1)
    h2 = jnp.tanh(
        jnp.dot(h1.astype(jnp.bfloat16), w2_ref[...],
                preferred_element_type=jnp.float32) + b2
    )

    # Layer 3 (H -> 1), emitted lane-dense: contract over H producing (1, tb)
    # instead of a (tb, 1) column (avoids masked single-lane stores).
    out = lax.dot_general(
        w3_row, h2, (((1,), (1,)), ((), ())),
        preferred_element_type=jnp.float32) + b3
    o_ref[0] = out.astype(o_ref.dtype)


def pack_params(params):
    """Pack the 6 PyTorch-style params into 3 kernel operands (done once).

    W1 / W2 stay separate bf16 operands so the kernel never slices a weight
    slab at a non-(16,128) tile boundary, regardless of state_dim."""
    w1, b1, w2, b2, w3, b3 = params
    state_dim, hidden = w1.shape
    w1b = w1.astype(jnp.bfloat16)                                   # (state_dim, H)
    w2b = w2.astype(jnp.bfloat16)                                   # (H, H)
    tail = jnp.concatenate(
        [
            b1.reshape(1, hidden),
            b2.reshape(1, hidden),
            w3.reshape(1, hidden),
            jnp.broadcast_to(jnp.reshape(b3, (1, 1)), (1, hidden)),
        ],
        axis=0,
    ).astype(jnp.float32)                                           # (4, H)
    return w1b, w2b, tail


def critic_forward(state, packed_params, tile_b=2048):
    """state: [B, state_dim] f32 -> [B, 1] f32."""
    w1, w2, tail = packed_params
    B, state_dim = state.shape
    hidden = tail.shape[1]
    assert w1.shape == (state_dim, hidden) and w2.shape == (hidden, hidden)

    # Row tile: as large as reasonable (per-grid-step overhead ~0.35 us dwarfs
    # the per-tile compute here); multiple of 8 for the f32 activation block.
    b_ceil = _round_up(max(B, 1), 8)
    tb = _round_up(min(tile_b, b_ceil), 8)
    # v7x has 2 TensorCores: for big batches keep >= 2 balanced tiles so both
    # cores get work via the "parallel" grid axis (no-op on v5e/v6e).
    if _num_tensorcores() >= 2 and b_ceil >= 512 and tb >= b_ceil:
        tb = _round_up(pl.cdiv(b_ceil, 2), 16)
    num_tiles = pl.cdiv(B, tb)

    flops = 2 * num_tiles * tb * (state_dim * hidden + hidden * hidden + hidden)
    transcendentals = 2 * num_tiles * tb * hidden
    bytes_accessed = (B * state_dim * 4 + w1.size * 2 + w2.size * 2
                      + tail.size * 4 + num_tiles * tb * 4)

    out = pl.pallas_call(
        critic_kernel,
        out_shape=jax.ShapeDtypeStruct((num_tiles, 1, tb), jnp.float32),
        grid=(num_tiles,),
        in_specs=[
            # Activation stream: one f32 row tile per step (auto double-buffered;
            # ragged last tile is handled by Pallas, extra rows sliced off below).
            pl.BlockSpec((tb, state_dim), lambda i: (i, 0)),
            # Weights / tail: constant block index -> DMA'd once, VMEM-resident.
            pl.BlockSpec((state_dim, hidden), lambda i: (0, 0)),
            pl.BlockSpec((hidden, hidden), lambda i: (0, 0)),
            pl.BlockSpec((4, hidden), lambda i: (0, 0)),
        ],
        # Lane-dense output slab per tile (last two block dims == full dims).
        out_specs=pl.BlockSpec((1, 1, tb), lambda i: (i, 0, 0)),
        compiler_params=pltpu.CompilerParams(
            dimension_semantics=("parallel",),
        ),
        cost_estimate=pl.CostEstimate(
            flops=flops,
            transcendentals=transcendentals,
            bytes_accessed=bytes_accessed,
        ),
    )(state, w1, w2, tail)

    # (num_tiles, 1, tb) -> (B, 1); padded rows (ragged last tile) are dropped.
    return out.reshape(num_tiles * tb, 1)[:B]


def init_params(key, state_dim, hidden_size=64):
    """Deterministic init mimicking torch.nn.Linear defaults (uniform +/- 1/sqrt(fan_in)).
    Weights stored as [in, out]; biases as [1, out]."""
    keys = jax.random.split(key, 6)

    def lin(kw, kb, fan_in, fan_out):
        bound = 1.0 / jnp.sqrt(jnp.float32(fan_in))
        w = jax.random.uniform(kw, (fan_in, fan_out), jnp.float32, -bound, bound)
        b = jax.random.uniform(kb, (1, fan_out), jnp.float32, -bound, bound)
        return w, b

    w1, b1 = lin(keys[0], keys[1], state_dim, hidden_size)
    w2, b2 = lin(keys[2], keys[3], hidden_size, hidden_size)
    w3, b3 = lin(keys[4], keys[5], hidden_size, 1)
    return (w1, b1, w2, b2, w3, b3)


def critic_reference(state, params):
    """Pure-JAX f32 reference of the PyTorch forward for correctness check."""
    w1, b1, w2, b2, w3, b3 = params
    h1 = jnp.tanh(state @ w1 + b1)
    h2 = jnp.tanh(h1 @ w2 + b2)
    return h2 @ w3 + b3


if __name__ == "__main__":
    key = jax.random.PRNGKey(0)
    k_params, k_state, k_state2 = jax.random.split(key, 3)

    batch = 32
    state_dim = 16
    hidden_size = 64

    params = init_params(k_params, state_dim, hidden_size)
    packed = pack_params(params)

    # Small single-tile case.
    state = jax.random.normal(k_state, (batch, state_dim), jnp.float32)
    out = jax.block_until_ready(critic_forward(state, packed))
    ref = critic_reference(state, params)
    assert out.shape == (batch, 1), out.shape
    # bf16 matmul inputs (f32 accumulation) -> loosened tolerance vs f32 reference.
    assert jnp.allclose(out, ref, atol=1e-2, rtol=1e-2), (out, ref)

    # Multi-tile grid + ragged-last-tile path (B=40 with 16-row tiles -> 3 tiles).
    state2 = jax.random.normal(k_state2, (40, state_dim), jnp.float32)
    out2 = jax.block_until_ready(critic_forward(state2, packed, tile_b=16))
    ref2 = critic_reference(state2, params)
    assert out2.shape == (40, 1), out2.shape
    assert jnp.allclose(out2, ref2, atol=1e-2, rtol=1e-2), (out2, ref2)

    print("KERNEL_OK")
</pallas_src>

<mosaic_0001>
module attributes {stable_mosaic.version = 11 : i64} {
  func.func @critic_kernel(%arg0: i32, %arg1: memref<32x16xf32, #tpu.memory_space<vmem>>, %arg2: memref<16x64xbf16, #tpu.memory_space<vmem>>, %arg3: memref<64x64xbf16, #tpu.memory_space<vmem>>, %arg4: memref<4x64xf32, #tpu.memory_space<vmem>>, %arg5: memref<1x1x32xf32, #tpu.memory_space<vmem>>) attributes {dimension_semantics = [#tpu.dimension_semantics<parallel>], iteration_bounds = array<i64: 1>, scalar_prefetch = 0 : i64, scratch_operands = 0 : i64, tpu.core_type = #tpu.core_type<tc>, window_params = [{transform_indices = @transform_0, window_bounds = array<i64: 32, 16>}, {pipeline_mode = #tpu.pipeline_mode<synchronous>, transform_indices = @transform_1, window_bounds = array<i64: 16, 64>}, {pipeline_mode = #tpu.pipeline_mode<synchronous>, transform_indices = @transform_2, window_bounds = array<i64: 64, 64>}, {pipeline_mode = #tpu.pipeline_mode<synchronous>, transform_indices = @transform_3, window_bounds = array<i64: 4, 64>}, {transform_indices = @transform_4, window_bounds = array<i64: 1, 1, 32>}]} {
    %c0 = arith.constant 0 : index
    %c0_0 = arith.constant 0 : index
    %0 = vector.load %arg1[%c0, %c0_0] : memref<32x16xf32, #tpu.memory_space<vmem>>, vector<32x16xf32>
    %1 = arith.truncf %0 : vector<32x16xf32> to vector<32x16xbf16>
    %c0_1 = arith.constant 0 : index
    %c0_2 = arith.constant 0 : index
    %2 = vector.load %arg4[%c0_1, %c0_2] : memref<4x64xf32, #tpu.memory_space<vmem>>, vector<1x64xf32>
    %c1 = arith.constant 1 : index
    %c0_3 = arith.constant 0 : index
    %3 = vector.load %arg4[%c1, %c0_3] : memref<4x64xf32, #tpu.memory_space<vmem>>, vector<1x64xf32>
    %c2 = arith.constant 2 : index
    %c0_4 = arith.constant 0 : index
    %4 = vector.load %arg4[%c2, %c0_4] : memref<4x64xf32, #tpu.memory_space<vmem>>, vector<1x64xf32>
    %c3 = arith.constant 3 : index
    %c0_5 = arith.constant 0 : index
    %5 = vector.load %arg4[%c3, %c0_5] : memref<4x64xf32, #tpu.memory_space<vmem>>, vector<1x1xf32>
    %c0_6 = arith.constant 0 : index
    %c0_7 = arith.constant 0 : index
    %6 = vector.load %arg2[%c0_6, %c0_7] : memref<16x64xbf16, #tpu.memory_space<vmem>>, vector<16x64xbf16>
    %cst = arith.constant dense<0.000000e+00> : vector<32x64xf32>
    %7 = tpu.matmul %1, %6, %cst {dimension_numbers = #tpu.dot_dimension_numbers<[1], [0], [0], [1], [0, 0, 1, 1], [], []>} : vector<32x16xbf16>, vector<16x64xbf16>, vector<32x64xf32> -> vector<32x64xf32>
    %8 = vector.broadcast %2 : vector<1x64xf32> to vector<32x64xf32>
    %9 = arith.addf %7, %8 : vector<32x64xf32>
    %10 = math.tanh %9 : vector<32x64xf32>
    %11 = arith.truncf %10 : vector<32x64xf32> to vector<32x64xbf16>
    %c0_8 = arith.constant 0 : index
    %c0_9 = arith.constant 0 : index
    %12 = vector.load %arg3[%c0_8, %c0_9] : memref<64x64xbf16, #tpu.memory_space<vmem>>, vector<64x64xbf16>
    %cst_10 = arith.constant dense<0.000000e+00> : vector<32x64xf32>
    %13 = tpu.matmul %11, %12, %cst_10 {dimension_numbers = #tpu.dot_dimension_numbers<[1], [0], [0], [1], [0, 0, 1, 1], [], []>} : vector<32x64xbf16>, vector<64x64xbf16>, vector<32x64xf32> -> vector<32x64xf32>
    %14 = vector.broadcast %3 : vector<1x64xf32> to vector<32x64xf32>
    %15 = arith.addf %13, %14 : vector<32x64xf32>
    %16 = math.tanh %15 : vector<32x64xf32>
    %cst_11 = arith.constant dense<0.000000e+00> : vector<1x32xf32>
    %17 = tpu.matmul %4, %16, %cst_11 {dimension_numbers = #tpu.dot_dimension_numbers<[1], [1], [0], [0], [0, 0, 1, 0], [], []>} : vector<1x64xf32>, vector<32x64xf32>, vector<1x32xf32> -> vector<1x32xf32>
    %18 = vector.broadcast %5 : vector<1x1xf32> to vector<1x32xf32>
    %19 = arith.addf %17, %18 : vector<1x32xf32>
    %c0_12 = arith.constant 0 : index
    %c0_13 = arith.constant 0 : index
    %c0_14 = arith.constant 0 : index
    %20 = vector.load %arg5[%c0_12, %c0_13, %c0_14] : memref<1x1x32xf32, #tpu.memory_space<vmem>>, vector<1x1x32xf32>
    %21 = vector.shape_cast %20 : vector<1x1x32xf32> to vector<1x32xf32>
    %22 = vector.shape_cast %19 : vector<1x32xf32> to vector<1x1x32xf32>
    tpu.vector_store %arg5[%c0_12, %c0_13, %c0_14], %22 {strides = array<i32>} : memref<1x1x32xf32, #tpu.memory_space<vmem>>, vector<1x1x32xf32>,
    return
  }
  func.func @transform_0(%arg0: i32) -> (i32, i32) {
    %c0_i32 = arith.constant 0 : i32
    %c0_i32_0 = arith.constant 0 : i32
    return %arg0, %c0_i32 : i32, i32
  }
  func.func @transform_1(%arg0: i32) -> (i32, i32) {
    %c0_i32 = arith.constant 0 : i32
    %c0_i32_0 = arith.constant 0 : i32
    %c0_i32_1 = arith.constant 0 : i32
    return %c0_i32, %c0_i32_0 : i32, i32
  }
  func.func @transform_2(%arg0: i32) -> (i32, i32) {
    %c0_i32 = arith.constant 0 : i32
    %c0_i32_0 = arith.constant 0 : i32
    %c0_i32_1 = arith.constant 0 : i32
    return %c0_i32, %c0_i32_0 : i32, i32
  }
  func.func @transform_3(%arg0: i32) -> (i32, i32) {
    %c0_i32 = arith.constant 0 : i32
    %c0_i32_0 = arith.constant 0 : i32
    %c0_i32_1 = arith.constant 0 : i32
    return %c0_i32, %c0_i32_0 : i32, i32
  }
  func.func @transform_4(%arg0: i32) -> (i32, i32, i32) {
    %c0_i32 = arith.constant 0 : i32
    %c0_i32_0 = arith.constant 0 : i32
    %c0_i32_1 = arith.constant 0 : i32
    return %arg0, %c0_i32, %c0_i32_0 : i32, i32, i32
  }
}

</mosaic_0001>

<bundles_post_ra>
// kernel: tpu_custom_call.1
= control target key start
LH: loop header
LB: loop body
LE: loop exit
PB: predicated region body
PF: predicated region fallthrough
CT: control target
= control target key end

     0   :  { %vm41_vm0 = vcmask 130048   ;;  %s509_s0 = inlined_call_operand.vmem [shape: f32[32,16], index: 0, kind: input, shape index: {}]   ;;  %s510_s1 = inlined_call_operand.vmem [shape: bf16[16,64], index: 1, kind: input, shape index: {}]   ;;  %s511_s2 = inlined_call_operand.vmem [shape: bf16[64,64], index: 2, kind: input, shape index: {}]   ;;  %s512_s3 = inlined_call_operand.vmem [shape: f32[4,64], index: 3, kind: input, shape index: {}]   ;;  %s513_s4 = inlined_call_operand.hbm [shape: f32[1,1,32], index: 4, kind: output, shape index: {}]  }
   0x1   :  { %v378_v0 = vld [vmem:[%s510_s1] sm:$0xff]   ;;  %v20_v2 = vld [vmem:[%s509_s0 + $0x8] sm:$0xff]  ;;  %v21_v3 = vld [vmem:[%s509_s0 + $0x10] sm:$0xff] }
   0x2   :  { %v19_v1 = vld [vmem:[%s509_s0] sm:$0xff]  ;;  %335 = vmatprep.subr.bf16.mxu0 %v378_v0  ;;  %v22_v5 = vld [vmem:[%s509_s0 + $0x18] sm:$0xff] }
   0x3   :  { %v23_v4 = vpack.c.bf16 %v20_v2, %v19_v1  ;;  %336 = vmatpush3.bf16.msra.mxu0 %v378_v0  ;;  %v24_v6 = vpack.c.bf16 %v22_v5, %v21_v3 }
   0x5   :  { %337 = vmatprep.mubr.msk.bf16.mxu0 %vm41_vm0, %v23_v4 }
   0x6   :  { %9 = vsyncpa [#allocation3], 0  ;;  %338 = vmatmul.mubr.msk.bf16.vlgmr.msra.gmra.mrb[0].mxu0 %vm41_vm0, %v24_v6  ;;  %v379_v7 = vld [vmem:[%s511_s2] sm:$0xff]   ;;  %v380_v8 = vld [vmem:[%s511_s2 + $0x8] sm:$0xff]   ;;  %vm139_vm1 = vcmask 523264   ;;  %v423_v26 = vmov 0.0|0.0  }
   0x7   :  { %341 = vmatprep.subr.bf16.mxu1 %v379_v7  ;;  %v381_v9 = vld [vmem:[%s511_s2 + $0x10] sm:$0xff]   ;;  %v382_v10 = vld [vmem:[%s511_s2 + $0x18] sm:$0xff]   ;;  %v305_v11 = vld [vmem:[%s512_s3] ss:$0 sm:$0xff]  ;;  %364 = vmatprep.subr.bf16.mxu0 %v423_v26  ;;  %vm424_vm2 = vmmov 0   ;;  %v425_v27 = vmov 0.0  }
   0x8   :  { %342 = vmatpush3.bf16.msra.mxu1 %v379_v7  ;;  %361 = vmatprep.mubr.msk.f32.mxu0 %vm424_vm2, %v425_v27  ;;  %v28_v28 = vld [vmem:[%s512_s3 + $0x3] sm:$0x1]  ;;  %v426_v29 = vmov 0   ;;  %v309_v30 = vld [vmem:[%s512_s3 + $0x1] ss:$0 sm:$0xff]  ;;  %vm366_vm3 = vmpackc.low %vm139_vm1, %vm139_vm1  ;;  %s427_s12 = smov [#allocation2]  }
   0x9   :  { %343 = vmatprep.subr.bf16.mxu1 %v380_v8  ;;  %377 = vset.pattern.permute.xlu0 %v426_v29  ;;  %v27_v45 = vld [vmem:[%s512_s3 + $0x2] sm:$0x1]  ;;  %s297_s13 = sshll.u32 %s427_s12, 4  ;;  %vm289_vm4 = vcmask 253952   ;;  %s298_s13 = int_to_ptr.vmem [resolvable:$true] %s297_s13 }
   0xa   :  { %201 = vperm.xlu0 %377, %v28_v28   ;;  %s399_s14 = scalar_lea.vmem %s298_s13, 16  ;;  %s403_s15 = scalar_lea.vmem %s298_s13, 32 }
   0xb   :  { %p400_p0 = scmp.ne.s32.totalorder %s298_s13, %s399_s14  ;;  %p404_p1 = scmp.lt.s32.totalorder %s298_s13, %s298_s13 }
   0xc   :  { %344 = vmatpush3.bf16.msra.mxu1 %v380_v8  ;;  %p405_p2 = scmp.lt.s32.totalorder %s403_s15, %s399_s14 }
   0xd   :  { %345 = vmatprep.subr.bf16.mxu1 %v381_v9 }
   0xe   :  { %p406_p3 = por %p405_p2, %p404_p1 }
  0x10   :  { %346 = vmatpush3.bf16.msra.mxu1 %v381_v9  ;;  %p407_p4 = pnand %p406_p3, %p400_p0 }
  0x11   :  { %347 = vmatprep.subr.bf16.mxu1 %v382_v10 }
  0x14   :  { %348 = vmatpush3.bf16.msra.mxu1 %v382_v10 }
  0x89   :  { %v202_v46 = vpop.permute.xlu0 %201 }
  0xd9   :  { %v339_v12 = vpop.f32.mrb[0].mxu0 }
  0xda   :  { %v91_v13 = vadd.f32 %v339_v12, %v305_v11  ;;  %v82_v14 = vpop.f32.mrb[1].mxu0 }
  0xdb   :  { %v83_v15 = vadd.f32 %v305_v11, %v82_v14  ;;  %v340_v16 = vpop.f32.mrb[2].mxu0 }
  0xdc   :  { %383 = vtanh.f32 %v91_v13  ;;  %v94_v17 = vadd.f32 %v340_v16, %v305_v11  ;;  %v85_v18 = vpop.f32.mrb[3].mxu0 }
  0xdd   :  { %385 = vtanh.f32 %v83_v15  ;;  %v86_v19 = vadd.f32 %v305_v11, %v85_v18 }
  0xde   :  { %387 = vtanh.f32 %v94_v17 }
  0xdf   :  { %389 = vtanh.f32 %v86_v19 }
  0xe6   :  { %v384_v20 = vpop.eup %383 }
  0xe7   :  { %v386_v21 = vpop.eup %385 }
  0xe8   :  { %v388_v22 = vpop.eup %387 }
  0xe9   :  { %v390_v23 = vpop.eup %389  ;;  %v102_v24 = vpack.c.bf16 %v388_v22, %v384_v20 }
  0xea   :  { %v101_v25 = vpack.c.bf16 %v390_v23, %v386_v21 }
  0xec   :  { %349 = vmatprep.mubr.msk.bf16.mxu1 %vm139_vm1, %v101_v25 }
  0xed   :  { %350 = vmatmul.mubr.msk.bf16.vlgmr.msra.gmra.mrb[0].mxu1 %vm139_vm1, %v102_v24 }
 0x1c0   :  { %v351_v31 = vpop.f32.mrb[0].mxu1 }
 0x1c1   :  { %v189_v32 = vadd.f32 %v351_v31, %v309_v30  ;;  %v180_v33 = vpop.f32.mrb[1].mxu1 }
 0x1c2   :  { %v181_v34 = vadd.f32 %v309_v30, %v180_v33  ;;  %v352_v35 = vpop.f32.mrb[2].mxu1 }
 0x1c3   :  { %391 = vtanh.f32 %v189_v32  ;;  %v192_v36 = vadd.f32 %v352_v35, %v309_v30  ;;  %v183_v37 = vpop.f32.mrb[3].mxu1 }
 0x1c4   :  { %393 = vtanh.f32 %v181_v34  ;;  %v184_v38 = vadd.f32 %v309_v30, %v183_v37 }
 0x1c5   :  { %395 = vtanh.f32 %v192_v36 }
 0x1c6   :  { %397 = vtanh.f32 %v184_v38 }
 0x1cd   :  { %v392_v39 = vpop.eup %391 }
 0x1ce   :  { %v394_v40 = vpop.eup %393 }
 0x1cf   :  { %v396_v41 = vpop.eup %395 }
 0x1d0   :  { %v398_v42 = vpop.eup %397  ;;  %v369_v43 = vpack.c.bf16 %v396_v41, %v392_v39 }
 0x1d1   :  { %v365_v44 = vpack.c.bf16 %v398_v42, %v394_v40 }
 0x1d3   :  { %367 = vmatpush3.bf16.xpose.msk.msra.mxu0 %vm366_vm3, %v365_v44 }
 0x1d4   :  { %368 = vmatprep.subr.bf16.mxu0 %v423_v26 }
 0x1db   :  { %371 = vmatpush3.bf16.xpose.msk.msra.mxu0 %vm366_vm3, %v369_v43 }
 0x1e2   :  { %362 = vmatmul.mubr.msk.f32.vlgmr.msra.gmra.mrb[4].mxu0 %vm139_vm1, %v27_v45 }
 0x2b5   :  { %v285_v47 = vpop.f32.mrb[4].mxu0 }
 0x2b6   :  { %v286_v48 = vadd.f32 %v285_v47, %v202_v46  ;;  %v363_v49 = vpop.f32.mrb[5].mxu0 }
 0x2b8   :  { %290 = vst.msk [vmem:[#allocation2] sm:$0x1] %vm289_vm4, %v286_v48 }
 0x2b9   :  { %410 = shalt.err (!%p407_p4)
}
 0x2ba   :  { %s411_s17 = scalar_lea.hbm %s513_s4, 16 }
 0x2bb   :  { %p412_p5 = scmp.ne.s32.totalorder %s513_s4, %s411_s17  ;;  %p415_p6 = scmp.lt.u32.totalorder %s411_s17, %s513_s4 }
 0x2bd   :  { %p417_p7 = pnand %p415_p6, %p412_p5 }
 0x2bf   :  { %420 = shalt.err (!%p417_p7)
}
 0x2c0   :  { %300 = dma.vmem_to_hbm [thread:$0]  %s298_s13, 16, %s513_s4, [#allocation3]  }
 0x2c1   :  { %421 = dma.done.wait [#allocation3], 16  }
 0x2c2   :  { %422 = vsyncadd [#allocation3], 4294967280 }
 0x2c3   :  { %304 = vsyncpa [#allocation3], 1 }

</bundles_post_ra>
